<compile_context>
chip_gen: v7x
topology: tpu7x:2x2x1
jax: 0.10.0
libtpu: 0.0.40
codegen_flags: <defaults>
</compile_context>

<pallas_src>
import functools

import jax
import jax.numpy as jnp
from jax.experimental import pallas as pl
from jax.experimental.pallas import tpu as pltpu


def ffn_kernel(x_ref, w1_ref, b1_ref, w2_ref, b2_ref, o_ref):
    # x_ref: (tm, d_model), w1_ref: (d_model, d_ff), b1_ref: (1, d_ff)
    # w2_ref: (d_ff, d_model), b2_ref: (1, d_model), o_ref: (tm, d_model)
    #
    # Feed operands at native dtype; MXU accumulates in f32.
    h = jnp.dot(x_ref[...], w1_ref[...], preferred_element_type=jnp.float32)
    h = h + b1_ref[...].astype(jnp.float32)
    h = jnp.maximum(h, 0.0)                       # ReLU (VPU)
    # dropout(p=0.1) -> identity (eval / inference mode)
    y = jnp.dot(h.astype(w2_ref.dtype), w2_ref[...],
                preferred_element_type=jnp.float32)
    y = y + b2_ref[...].astype(jnp.float32)
    o_ref[...] = y.astype(o_ref.dtype)


def _build_specs(tm_eff, d_model, d_ff, weight_mode):
    # Constant-index weights/biases: never re-fetched across the token grid.
    kw = {} if weight_mode is None else {"pipeline_mode": weight_mode}
    in_specs = [
        pl.BlockSpec((tm_eff, d_model), lambda i: (i, 0)),          # x rows
        pl.BlockSpec((d_model, d_ff), lambda i: (0, 0), **kw),      # W1
        pl.BlockSpec((1, d_ff), lambda i: (0, 0), **kw),            # b1
        pl.BlockSpec((d_ff, d_model), lambda i: (0, 0), **kw),      # W2
        pl.BlockSpec((1, d_model), lambda i: (0, 0), **kw),         # b2
    ]
    out_specs = pl.BlockSpec((tm_eff, d_model), lambda i: (i, 0))
    return in_specs, out_specs


def positionwise_feed_forward(x, w1, b1, w2, b2, *, tm=256,
                              vmem_limit_bytes=64 << 20):
    """x: (batch, seq, d_model). Returns same shape/dtype. Eval-mode dropout."""
    batch, seq, d_model = x.shape
    d_ff = w1.shape[1]
    n = batch * seq

    # Row tile: <= tm, multiple of 8 sublanes; pad token count to a multiple.
    n_rounded = max(8, ((n + 7) // 8) * 8)
    tm_eff = min(((tm + 7) // 8) * 8, n_rounded)
    n_pad = pl.cdiv(n, tm_eff) * tm_eff

    x2d = x.reshape(n, d_model)
    if n_pad != n:
        x2d = jnp.pad(x2d, ((0, n_pad - n), (0, 0)))
    b1_2d = b1.reshape(1, d_ff)
    b2_2d = b2.reshape(1, d_model)

    # Advisory cost: two matmuls over all (padded) tokens.
    w_bytes = jnp.dtype(w1.dtype).itemsize
    x_bytes = jnp.dtype(x.dtype).itemsize
    cost = pl.CostEstimate(
        flops=2 * n_pad * d_model * d_ff * 2,
        transcendentals=0,
        bytes_accessed=(2 * n_pad * d_model * x_bytes            # x in, y out
                        + 2 * d_model * d_ff * w_bytes           # W1, W2
                        + (d_ff + d_model) * w_bytes))           # b1, b2

    def run(weight_mode):
        in_specs, out_specs = _build_specs(tm_eff, d_model, d_ff, weight_mode)
        out = pl.pallas_call(
            ffn_kernel,
            out_shape=jax.ShapeDtypeStruct((n_pad, d_model), x.dtype),
            grid_spec=pltpu.PrefetchScalarGridSpec(
                num_scalar_prefetch=0,
                grid=(n_pad // tm_eff,),
                in_specs=in_specs,
                out_specs=out_specs,
            ),
            compiler_params=pltpu.CompilerParams(
                dimension_semantics=("parallel",),
                vmem_limit_bytes=vmem_limit_bytes),
            cost_estimate=cost,
        )(x2d, w1, b1_2d, w2, b2_2d)
        return jax.block_until_ready(out)

    try:
        # Single-buffer the resident weights/biases (halves their VMEM cost).
        out2d = run(pl.Buffered(1))
    except Exception:
        # Fallback for JAX versions that reject buffer_count=1 on inputs;
        # identical results, just default double-buffered weights.
        out2d = run(None)

    return out2d[:n].reshape(batch, seq, d_model)


def init_params(key, d_model, d_ff, dtype=jnp.float32):
    """Deterministic init mimicking nn.Linear's uniform(-1/sqrt(fan_in), +)."""
    k1, k2, k3, k4 = jax.random.split(key, 4)
    bound1 = 1.0 / (d_model ** 0.5)
    bound2 = 1.0 / (d_ff ** 0.5)
    # Stored as (in_features, out_features) == transpose of PyTorch weight.
    w1 = jax.random.uniform(k1, (d_model, d_ff), dtype, -bound1, bound1)
    b1 = jax.random.uniform(k2, (d_ff,), dtype, -bound1, bound1)
    w2 = jax.random.uniform(k3, (d_ff, d_model), dtype, -bound2, bound2)
    b2 = jax.random.uniform(k4, (d_model,), dtype, -bound2, bound2)
    return w1, b1, w2, b2


def _reference(x, w1, b1, w2, b2):
    # Plain-JAX reference (dropout = identity, eval mode).
    return jnp.maximum(x @ w1 + b1, 0.0) @ w2 + b2


if __name__ == "__main__":
    key = jax.random.PRNGKey(0)
    kx1, kx2, kp = jax.random.split(key, 3)

    d_model, d_ff = 32, 64
    w1, b1, w2, b2 = init_params(kp, d_model, d_ff)

    # Case 1: token count a multiple of 8.
    x = jax.random.normal(kx1, (2, 8, d_model), jnp.float32)
    out = positionwise_feed_forward(x, w1, b1, w2, b2)
    out = jax.block_until_ready(out)
    ref = _reference(x, w1, b1, w2, b2)
    assert out.shape == x.shape
    assert jnp.allclose(out, ref, atol=1e-5, rtol=1e-5)

    # Case 2: ragged token count (exercises the padding / remainder path).
    x2 = jax.random.normal(kx2, (3, 5, d_model), jnp.float32)
    out2 = positionwise_feed_forward(x2, w1, b1, w2, b2)
    out2 = jax.block_until_ready(out2)
    ref2 = _reference(x2, w1, b1, w2, b2)
    assert out2.shape == x2.shape
    assert jnp.allclose(out2, ref2, atol=1e-5, rtol=1e-5)

    print("KERNEL_OK")
</pallas_src>

<mosaic_0001>
module attributes {stable_mosaic.version = 11 : i64} {
  func.func @ffn_kernel(%arg0: i32, %arg1: memref<16x32xf32, #tpu.memory_space<vmem>>, %arg2: memref<32x64xf32, #tpu.memory_space<vmem>>, %arg3: memref<1x64xf32, #tpu.memory_space<vmem>>, %arg4: memref<64x32xf32, #tpu.memory_space<vmem>>, %arg5: memref<1x32xf32, #tpu.memory_space<vmem>>, %arg6: memref<16x32xf32, #tpu.memory_space<vmem>>) attributes {dimension_semantics = [#tpu.dimension_semantics<parallel>], iteration_bounds = array<i64: 1>, scalar_prefetch = 0 : i64, scratch_operands = 0 : i64, tpu.core_type = #tpu.core_type<tc>, window_params = [{transform_indices = @transform_0, window_bounds = array<i64: 16, 32>}, {pipeline_mode = #tpu.pipeline_mode<synchronous>, transform_indices = @transform_1, window_bounds = array<i64: 32, 64>}, {pipeline_mode = #tpu.pipeline_mode<synchronous>, transform_indices = @transform_2, window_bounds = array<i64: 1, 64>}, {pipeline_mode = #tpu.pipeline_mode<synchronous>, transform_indices = @transform_3, window_bounds = array<i64: 64, 32>}, {pipeline_mode = #tpu.pipeline_mode<synchronous>, transform_indices = @transform_4, window_bounds = array<i64: 1, 32>}, {transform_indices = @transform_5, window_bounds = array<i64: 16, 32>}]} {
    %c0 = arith.constant 0 : index
    %c0_0 = arith.constant 0 : index
    %0 = vector.load %arg1[%c0, %c0_0] : memref<16x32xf32, #tpu.memory_space<vmem>>, vector<16x32xf32>
    %c0_1 = arith.constant 0 : index
    %c0_2 = arith.constant 0 : index
    %1 = vector.load %arg2[%c0_1, %c0_2] : memref<32x64xf32, #tpu.memory_space<vmem>>, vector<32x64xf32>
    %cst = arith.constant dense<0.000000e+00> : vector<16x64xf32>
    %2 = tpu.matmul %0, %1, %cst {dimension_numbers = #tpu.dot_dimension_numbers<[1], [0], [0], [1], [0, 0, 1, 1], [], []>} : vector<16x32xf32>, vector<32x64xf32>, vector<16x64xf32> -> vector<16x64xf32>
    %c0_3 = arith.constant 0 : index
    %c0_4 = arith.constant 0 : index
    %3 = vector.load %arg3[%c0_3, %c0_4] : memref<1x64xf32, #tpu.memory_space<vmem>>, vector<1x64xf32>
    %4 = vector.broadcast %3 : vector<1x64xf32> to vector<16x64xf32>
    %5 = arith.addf %2, %4 : vector<16x64xf32>
    %cst_5 = arith.constant 0.000000e+00 : f32
    %6 = vector.broadcast %cst_5 : f32 to vector<16x64xf32>
    %7 = arith.maximumf %5, %6 : vector<16x64xf32>
    %c0_6 = arith.constant 0 : index
    %c0_7 = arith.constant 0 : index
    %8 = vector.load %arg4[%c0_6, %c0_7] : memref<64x32xf32, #tpu.memory_space<vmem>>, vector<64x32xf32>
    %cst_8 = arith.constant dense<0.000000e+00> : vector<16x32xf32>
    %9 = tpu.matmul %7, %8, %cst_8 {dimension_numbers = #tpu.dot_dimension_numbers<[1], [0], [0], [1], [0, 0, 1, 1], [], []>} : vector<16x64xf32>, vector<64x32xf32>, vector<16x32xf32> -> vector<16x32xf32>
    %c0_9 = arith.constant 0 : index
    %c0_10 = arith.constant 0 : index
    %10 = vector.load %arg5[%c0_9, %c0_10] : memref<1x32xf32, #tpu.memory_space<vmem>>, vector<1x32xf32>
    %11 = vector.broadcast %10 : vector<1x32xf32> to vector<16x32xf32>
    %12 = arith.addf %9, %11 : vector<16x32xf32>
    %c0_11 = arith.constant 0 : index
    %c0_12 = arith.constant 0 : index
    %13 = vector.load %arg6[%c0_11, %c0_12] : memref<16x32xf32, #tpu.memory_space<vmem>>, vector<16x32xf32>
    tpu.vector_store %arg6[%c0_11, %c0_12], %12 {strides = array<i32>} : memref<16x32xf32, #tpu.memory_space<vmem>>, vector<16x32xf32>,
    return
  }
  func.func @transform_0(%arg0: i32) -> (i32, i32) {
    %c0_i32 = arith.constant 0 : i32
    %c0_i32_0 = arith.constant 0 : i32
    return %arg0, %c0_i32 : i32, i32
  }
  func.func @transform_1(%arg0: i32) -> (i32, i32) {
    %c0_i32 = arith.constant 0 : i32
    %c0_i32_0 = arith.constant 0 : i32
    %c0_i32_1 = arith.constant 0 : i32
    return %c0_i32, %c0_i32_0 : i32, i32
  }
  func.func @transform_2(%arg0: i32) -> (i32, i32) {
    %c0_i32 = arith.constant 0 : i32
    %c0_i32_0 = arith.constant 0 : i32
    %c0_i32_1 = arith.constant 0 : i32
    return %c0_i32, %c0_i32_0 : i32, i32
  }
  func.func @transform_3(%arg0: i32) -> (i32, i32) {
    %c0_i32 = arith.constant 0 : i32
    %c0_i32_0 = arith.constant 0 : i32
    %c0_i32_1 = arith.constant 0 : i32
    return %c0_i32, %c0_i32_0 : i32, i32
  }
  func.func @transform_4(%arg0: i32) -> (i32, i32) {
    %c0_i32 = arith.constant 0 : i32
    %c0_i32_0 = arith.constant 0 : i32
    %c0_i32_1 = arith.constant 0 : i32
    return %c0_i32, %c0_i32_0 : i32, i32
  }
  func.func @transform_5(%arg0: i32) -> (i32, i32) {
    %c0_i32 = arith.constant 0 : i32
    %c0_i32_0 = arith.constant 0 : i32
    return %arg0, %c0_i32 : i32, i32
  }
}

module attributes {stable_mosaic.version = 11 : i64} {
  func.func @ffn_kernel(%arg0: i32, %arg1: memref<16x32xf32, #tpu.memory_space<vmem>>, %arg2: memref<32x64xf32, #tpu.memory_space<vmem>>, %arg3: memref<1x64xf32, #tpu.memory_space<vmem>>, %arg4: memref<64x32xf32, #tpu.memory_space<vmem>>, %arg5: memref<1x32xf32, #tpu.memory_space<vmem>>, %arg6: memref<16x32xf32, #tpu.memory_space<vmem>>) attributes {dimension_semantics = [#tpu.dimension_semantics<parallel>], iteration_bounds = array<i64: 1>, scalar_prefetch = 0 : i64, scratch_operands = 0 : i64, tpu.core_type = #tpu.core_type<tc>, window_params = [{transform_indices = @transform_0, window_bounds = array<i64: 16, 32>}, {pipeline_mode = #tpu.pipeline_mode<synchronous>, transform_indices = @transform_1, window_bounds = array<i64: 32, 64>}, {pipeline_mode = #tpu.pipeline_mode<synchronous>, transform_indices = @transform_2, window_bounds = array<i64: 1, 64>}, {pipeline_mode = #tpu.pipeline_mode<synchronous>, transform_indices = @transform_3, window_bounds = array<i64: 64, 32>}, {pipeline_mode = #tpu.pipeline_mode<synchronous>, transform_indices = @transform_4, window_bounds = array<i64: 1, 32>}, {transform_indices = @transform_5, window_bounds = array<i64: 16, 32>}]} {
    %c0 = arith.constant 0 : index
    %c0_0 = arith.constant 0 : index
    %0 = vector.load %arg1[%c0, %c0_0] : memref<16x32xf32, #tpu.memory_space<vmem>>, vector<16x32xf32>
    %c0_1 = arith.constant 0 : index
    %c0_2 = arith.constant 0 : index
    %1 = vector.load %arg2[%c0_1, %c0_2] : memref<32x64xf32, #tpu.memory_space<vmem>>, vector<32x64xf32>
    %cst = arith.constant dense<0.000000e+00> : vector<16x64xf32>
    %2 = tpu.matmul %0, %1, %cst {dimension_numbers = #tpu.dot_dimension_numbers<[1], [0], [0], [1], [0, 0, 1, 1], [], []>} : vector<16x32xf32>, vector<32x64xf32>, vector<16x64xf32> -> vector<16x64xf32>
    %c0_3 = arith.constant 0 : index
    %c0_4 = arith.constant 0 : index
    %3 = vector.load %arg3[%c0_3, %c0_4] : memref<1x64xf32, #tpu.memory_space<vmem>>, vector<1x64xf32>
    %4 = vector.broadcast %3 : vector<1x64xf32> to vector<16x64xf32>
    %5 = arith.addf %2, %4 : vector<16x64xf32>
    %cst_5 = arith.constant 0.000000e+00 : f32
    %6 = vector.broadcast %cst_5 : f32 to vector<16x64xf32>
    %7 = arith.maximumf %5, %6 : vector<16x64xf32>
    %c0_6 = arith.constant 0 : index
    %c0_7 = arith.constant 0 : index
    %8 = vector.load %arg4[%c0_6, %c0_7] : memref<64x32xf32, #tpu.memory_space<vmem>>, vector<64x32xf32>
    %cst_8 = arith.constant dense<0.000000e+00> : vector<16x32xf32>
    %9 = tpu.matmul %7, %8, %cst_8 {dimension_numbers = #tpu.dot_dimension_numbers<[1], [0], [0], [1], [0, 0, 1, 1], [], []>} : vector<16x64xf32>, vector<64x32xf32>, vector<16x32xf32> -> vector<16x32xf32>
    %c0_9 = arith.constant 0 : index
    %c0_10 = arith.constant 0 : index
    %10 = vector.load %arg5[%c0_9, %c0_10] : memref<1x32xf32, #tpu.memory_space<vmem>>, vector<1x32xf32>
    %11 = vector.broadcast %10 : vector<1x32xf32> to vector<16x32xf32>
    %12 = arith.addf %9, %11 : vector<16x32xf32>
    %c0_11 = arith.constant 0 : index
    %c0_12 = arith.constant 0 : index
    %13 = vector.load %arg6[%c0_11, %c0_12] : memref<16x32xf32, #tpu.memory_space<vmem>>, vector<16x32xf32>
    tpu.vector_store %arg6[%c0_11, %c0_12], %12 {strides = array<i32>} : memref<16x32xf32, #tpu.memory_space<vmem>>, vector<16x32xf32>,
    return
  }
  func.func @transform_0(%arg0: i32) -> (i32, i32) {
    %c0_i32 = arith.constant 0 : i32
    %c0_i32_0 = arith.constant 0 : i32
    return %arg0, %c0_i32 : i32, i32
  }
  func.func @transform_1(%arg0: i32) -> (i32, i32) {
    %c0_i32 = arith.constant 0 : i32
    %c0_i32_0 = arith.constant 0 : i32
    %c0_i32_1 = arith.constant 0 : i32
    return %c0_i32, %c0_i32_0 : i32, i32
  }
  func.func @transform_2(%arg0: i32) -> (i32, i32) {
    %c0_i32 = arith.constant 0 : i32
    %c0_i32_0 = arith.constant 0 : i32
    %c0_i32_1 = arith.constant 0 : i32
    return %c0_i32, %c0_i32_0 : i32, i32
  }
  func.func @transform_3(%arg0: i32) -> (i32, i32) {
    %c0_i32 = arith.constant 0 : i32
    %c0_i32_0 = arith.constant 0 : i32
    %c0_i32_1 = arith.constant 0 : i32
    return %c0_i32, %c0_i32_0 : i32, i32
  }
  func.func @transform_4(%arg0: i32) -> (i32, i32) {
    %c0_i32 = arith.constant 0 : i32
    %c0_i32_0 = arith.constant 0 : i32
    %c0_i32_1 = arith.constant 0 : i32
    return %c0_i32, %c0_i32_0 : i32, i32
  }
  func.func @transform_5(%arg0: i32) -> (i32, i32) {
    %c0_i32 = arith.constant 0 : i32
    %c0_i32_0 = arith.constant 0 : i32
    return %arg0, %c0_i32 : i32, i32
  }
}

</mosaic_0001>

<bundles_post_ra>
// kernel: tpu_custom_call.1
= control target key start
LH: loop header
LB: loop body
LE: loop exit
PB: predicated region body
PF: predicated region fallthrough
CT: control target
= control target key end

     0   :  { %10 = vsyncpa [#allocation3], 0  ;;  %s657_s0 = inlined_call_operand.hbm [shape: f32[16,32], index: 0, kind: input, shape index: {}]   ;;  %s658_s1 = inlined_call_operand.hbm [shape: f32[32,64], index: 1, kind: input, shape index: {}]   ;;  %s659_s2 = inlined_call_operand.hbm [shape: f32[1,64], index: 2, kind: input, shape index: {}]   ;;  %s660_s3 = inlined_call_operand.hbm [shape: f32[64,32], index: 3, kind: input, shape index: {}]   ;;  %s661_s4 = inlined_call_operand.hbm [shape: f32[1,32], index: 4, kind: input, shape index: {}]   ;;  %s662_s5 = inlined_call_operand.hbm [shape: f32[16,32], index: 5, kind: output, shape index: {}]  }
   0x1   :  { %11 = vsyncpa [#allocation6], 0 }
   0x2   :  { %12 = vsyncpa [#allocation9], 0 }
   0x3   :  { %13 = vsyncpa [#allocation4], 0  ;;  %s524_s18 = smov [#allocation5]   ;;  %s525_s20 = smov [#allocation8]  }
   0x4   :  { %s31_s19 = sshll.u32 %s524_s18, 4  ;;  %s53_s21 = sshll.u32 %s525_s20, 4  ;;  %s32_s19 = int_to_ptr.vmem [resolvable:$true] %s31_s19  ;;  %s562_s21 = int_to_ptr.vmem [resolvable:$true] %s53_s21 }
   0x5   :  { %s384_s24 = scalar_lea.hbm %s658_s1, 512 }
   0x6   :  { %p385_p0 = scmp.ne.s32.totalorder %s658_s1, %s384_s24  ;;  %p388_p1 = scmp.lt.u32.totalorder %s384_s24, %s658_s1 }
   0x8   :  { %p390_p2 = pnand %p388_p1, %p385_p0 }
   0xa   :  { %393 = shalt.err (!%p390_p2)
}
   0xb   :  { %s394_s29 = scalar_lea.vmem %s32_s19, 512  ;;  %p399_p4 = scmp.lt.s32.totalorder %s32_s19, %s32_s19 }
   0xc   :  { %p395_p3 = scmp.ne.s32.totalorder %s32_s19, %s394_s29  ;;  %p400_p5 = scmp.lt.s32.totalorder %s394_s29, %s394_s29 }
   0xe   :  { %p401_p6 = por %p400_p5, %p399_p4 }
  0x10   :  { %p402_p7 = pnand %p401_p6, %p395_p3 }
  0x12   :  { %405 = shalt.err (!%p402_p7)
}
  0x13   :  { %s526_s30 = smov 128   ;;  %s527_s6 = smov 8  }
  0x14   :  { %37 = dma.hbm_to_vmem [thread:$0]  %s658_s1, 512, %s32_s19, [#allocation6], %s526_s30, %s526_s30, %s527_s6  }
  0x15   :  { %s406_s11 = scalar_lea.hbm %s660_s3, 1024 }
  0x16   :  { %p407_p8 = scmp.ne.s32.totalorder %s660_s3, %s406_s11  ;;  %p410_p9 = scmp.lt.u32.totalorder %s406_s11, %s660_s3 }
  0x18   :  { %p412_p10 = pnand %p410_p9, %p407_p8 }
  0x1a   :  { %415 = shalt.err (!%p412_p10)
}
  0x1b   :  { %s416_s16 = scalar_lea.vmem %s562_s21, 1024  ;;  %p421_p12 = scmp.lt.s32.totalorder %s562_s21, %s562_s21 }
  0x1c   :  { %p417_p11 = scmp.ne.s32.totalorder %s562_s21, %s416_s16  ;;  %p422_p13 = scmp.lt.s32.totalorder %s416_s16, %s416_s16 }
  0x1e   :  { %p423_p0 = por %p422_p13, %p421_p12 }
  0x20   :  { %p424_p1 = pnand %p423_p0, %p417_p11 }
  0x22   :  { %427 = shalt.err (!%p424_p1)
}
  0x23   :  { %59 = dma.hbm_to_vmem [thread:$0]  %s660_s3, 1024, %s562_s21, [#allocation9], %s526_s30, %s526_s30, %s527_s6  }
  0x24   :  { %s528_s18 = smov [#allocation2]   ;;  %s529_s20 = smov [#allocation7]  }
  0x25   :  { %s19_s19 = sshll.u32 %s528_s18, 4  ;;  %s44_s22 = sshll.u32 %s529_s20, 4  ;;  %s20_s19 = int_to_ptr.vmem [resolvable:$true] %s19_s19  ;;  %s45_s22 = int_to_ptr.vmem [resolvable:$true] %s44_s22 }
  0x26   :  { %s428_s25 = scalar_lea.hbm %s657_s0, 256 }
  0x27   :  { %p429_p2 = scmp.ne.s32.totalorder %s657_s0, %s428_s25  ;;  %p432_p3 = scmp.lt.u32.totalorder %s428_s25, %s657_s0 }
  0x29   :  { %p434_p4 = pnand %p432_p3, %p429_p2 }
  0x2b   :  { %437 = shalt.err (!%p434_p4)
}
  0x2c   :  { %s438_s3 = scalar_lea.vmem %s20_s19, 256  ;;  %p443_p6 = scmp.lt.s32.totalorder %s20_s19, %s20_s19 }
  0x2d   :  { %p439_p5 = scmp.ne.s32.totalorder %s20_s19, %s438_s3  ;;  %p444_p7 = scmp.lt.s32.totalorder %s438_s3, %s438_s3 }
  0x2f   :  { %p445_p8 = por %p444_p7, %p443_p6 }
  0x31   :  { %p446_p9 = pnand %p445_p8, %p439_p5 }
  0x33   :  { %449 = shalt.err (!%p446_p9)
}
  0x34   :  { %25 = dma.hbm_to_vmem [thread:$0]  %s657_s0, 256, %s20_s19, [#allocation3], %s526_s30, %s526_s30, %s527_s6  }
  0x35   :  { %s450_s10 = scalar_lea.hbm %s659_s2, 16 }
  0x36   :  { %p451_p10 = scmp.ne.s32.totalorder %s659_s2, %s450_s10  ;;  %p454_p11 = scmp.lt.u32.totalorder %s450_s10, %s659_s2 }
  0x38   :  { %p456_p12 = pnand %p454_p11, %p451_p10 }
  0x3a   :  { %459 = shalt.err (!%p456_p12)
}
  0x3b   :  { %s460_s15 = scalar_lea.vmem %s45_s22, 16  ;;  %s464_s16 = scalar_lea.vmem %s45_s22, 32 }
  0x3c   :  { %p461_p13 = scmp.ne.s32.totalorder %s45_s22, %s460_s15  ;;  %p465_p0 = scmp.lt.s32.totalorder %s45_s22, %s45_s22 }
  0x3d   :  { %p466_p1 = scmp.lt.s32.totalorder %s464_s16, %s460_s15 }
  0x3f   :  { %p467_p2 = por %p466_p1, %p465_p0 }
  0x41   :  { %p468_p3 = pnand %p467_p2, %p461_p13 }
  0x43   :  { %471 = shalt.err (!%p468_p3)
}
  0x44   :  { %47 = dma.hbm_to_vmem [thread:$0]  %s659_s2, 16, %s45_s22, [#allocation6]  }
  0x45   :  { %s530_s17 = smov [#allocation10]   ;;  %s472_s23 = scalar_lea.hbm %s661_s4, 16 }
  0x46   :  { %s66_s18 = sshll.u32 %s530_s17, 4  ;;  %p473_p4 = scmp.ne.s32.totalorder %s661_s4, %s472_s23  ;;  %s67_s18 = int_to_ptr.vmem [resolvable:$true] %s66_s18 }
  0x47   :  { %p476_p5 = scmp.lt.u32.totalorder %s472_s23, %s661_s4 }
  0x49   :  { %p478_p6 = pnand %p476_p5, %p473_p4 }
  0x4b   :  { %481 = shalt.err (!%p478_p6)
}
  0x4c   :  { %s482_s28 = scalar_lea.vmem %s67_s18, 16  ;;  %s486_s2 = scalar_lea.vmem %s67_s18, 32 }
  0x4d   :  { %p483_p7 = scmp.ne.s32.totalorder %s67_s18, %s482_s28  ;;  %p487_p8 = scmp.lt.s32.totalorder %s67_s18, %s67_s18 }
  0x4e   :  { %p488_p9 = scmp.lt.s32.totalorder %s486_s2, %s482_s28 }
  0x50   :  { %p489_p10 = por %p488_p9, %p487_p8 }
  0x52   :  { %p490_p11 = pnand %p489_p10, %p483_p7 }
  0x54   :  { %493 = shalt.err (!%p490_p11)
}
  0x55   :  { %69 = dma.hbm_to_vmem [thread:$0]  %s661_s4, 16, %s67_s18, [#allocation9]  }
  0x56   :  { %516 = dma.done.wait [#allocation3], 256  }
  0x57   :  { %517 = vsyncadd [#allocation3], 4294967040 }
  0x58   :  { %518 = dma.done.wait [#allocation6], 528  }
  0x59   :  { %519 = vsyncadd [#allocation6], 4294966768 }
  0x5a   :  { %520 = dma.done.wait [#allocation9], 1040  }
  0x5b   :  { %521 = vsyncadd [#allocation9], 4294966256  ;;  %vm98_vm0 = vcmask 261120   ;;  %v87_v0 = vld [vmem:[#allocation5] sm:$0xff]  ;;  %v88_v1 = vld [vmem:[#allocation5 + $0x8] sm:$0xff]  ;;  %vm197_vm1 = vcmask 523264  }
  0x5c   :  { %v89_v2 = vld [vmem:[#allocation5 + $0x10] sm:$0xff]  ;;  %v352_v3 = vpack.c.bf16 %v88_v1, %v87_v0  ;;  %v90_v4 = vld [vmem:[#allocation5 + $0x18] sm:$0xff]  ;;  %v182_v7 = vld [vmem:[#allocation8] sm:$0xff]  ;;  %s531_s4 = smov [#allocation11]  }
  0x5d   :  { %v85_v5 = vld [vmem:[#allocation2] sm:$0xff]  ;;  %v356_v6 = vpack.c.bf16 %v90_v4, %v89_v2  ;;  %v185_v11 = vld [vmem:[#allocation8 + $0x18] sm:$0xff]  ;;  %v186_v13 = vld [vmem:[#allocation8 + $0x20] sm:$0xff]  ;;  %s286_s3 = sshll.u32 %s531_s4, 4  ;;  %s287_s3 = int_to_ptr.vmem [resolvable:$true] %s286_s3 }
  0x5e   :  { %330 = vmatprep.mubr.msk.f32.mxu0 %vm98_vm0, %v85_v5  ;;  %v183_v8 = vld [vmem:[#allocation8 + $0x8] sm:$0xff]  ;;  %v184_v9 = vld [vmem:[#allocation8 + $0x10] sm:$0xff]  ;;  %353 = vmatprep.subr.bf16.mxu0 %v352_v3  ;;  %v189_v18 = vld [vmem:[#allocation8 + $0x38] sm:$0xff]  ;;  %s494_s21 = scalar_lea.vmem %s287_s3, 256  ;;  %p499_p13 = scmp.lt.s32.totalorder %s287_s3, %s287_s3 }
  0x5f   :  { %v360_v10 = vpack.c.bf16 %v183_v8, %v182_v7  ;;  %355 = vmatpush3.bf16.msra.mxu0 %v352_v3  ;;  %v364_v12 = vpack.c.bf16 %v185_v11, %v184_v9  ;;  %v187_v14 = vld [vmem:[#allocation8 + $0x28] sm:$0xff]  ;;  %v86_v16 = vld [vmem:[#allocation2 + $0x8] sm:$0xff]  ;;  %v300_v20 = vld [vmem:[#allocation7] ss:$0 sm:$0xff]  ;;  %p495_p12 = scmp.ne.s32.totalorder %s287_s3, %s494_s21  ;;  %p500_p0 = scmp.lt.s32.totalorder %s494_s21, %s494_s21 }
  0x60   :  { %357 = vmatprep.subr.bf16.mxu0 %v356_v6  ;;  %v368_v15 = vpack.c.bf16 %v187_v14, %v186_v13  ;;  %v188_v17 = vld [vmem:[#allocation8 + $0x30] sm:$0xff]  ;;  %v303_v27 = vld [vmem:[#allocation10] ss:$0 sm:$0xff] }
  0x61   :  { %361 = vmatprep.subr.bf16.mxu1 %v360_v10  ;;  %v372_v19 = vpack.c.bf16 %v189_v18, %v188_v17  ;;  %p501_p1 = por %p500_p0, %p499_p13 }
  0x62   :  { %363 = vmatpush3.bf16.msra.mxu1 %v360_v10 }
  0x63   :  { %365 = vmatprep.subr.bf16.mxu1 %v364_v12  ;;  %359 = vmatpush3.bf16.msra.mxu0 %v356_v6  ;;  %p502_p2 = pnand %p501_p1, %p495_p12 }
  0x66   :  { %367 = vmatpush3.bf16.msra.mxu1 %v364_v12  ;;  %331 = vmatmul.mubr.msk.f32.vlgmr.msra.gmra.mrb[0].mxu0 %vm98_vm0, %v86_v16 }
  0x67   :  { %369 = vmatprep.subr.bf16.mxu1 %v368_v15 }
  0x6a   :  { %371 = vmatpush3.bf16.msra.mxu1 %v368_v15 }
  0x6b   :  { %373 = vmatprep.subr.bf16.mxu1 %v372_v19 }
  0x6e   :  { %375 = vmatpush3.bf16.msra.mxu1 %v372_v19 }
 0x139   :  { %v332_v21 = vpop.f32.mrb[0].mxu0 }
 0x13a   :  { %v177_v22 = vadd.f32 %v332_v21, %v300_v20  ;;  %v171_v23 = vpop.f32.mrb[1].mxu0 }
 0x13b   :  { %v172_v24 = vadd.f32 %v300_v20, %v171_v23 }
 0x13c   :  { %v181_v26 = vmax.f32 %v177_v22, 0.0 }
 0x13d   :  { %v180_v25 = vmax.f32 %v172_v24, 0.0 }
 0x13f   :  { %349 = vmatprep.mubr.msk.f32.mxu1 %vm197_vm1, %v180_v25 }
 0x140   :  { %350 = vmatmul.mubr.msk.f32.vlgmr.msra.gmra.mrb[0].mxu1 %vm197_vm1, %v181_v26 }
 0x213   :  { %v351_v28 = vpop.f32.mrb[0].mxu1 }
 0x214   :  { %v276_v29 = vadd.f32 %v351_v28, %v303_v27  ;;  %v270_v30 = vpop.f32.mrb[1].mxu1 }
 0x215   :  { %v271_v31 = vadd.f32 %v303_v27, %v270_v30 }
 0x216   :  { %280 = vst.msk [vmem:[#allocation11 + $0x8] sm:$0xff] %vm98_vm0, %v276_v29 }
 0x217   :  { %279 = vst.msk [vmem:[#allocation11] sm:$0xff] %vm98_vm0, %v271_v31 }
 0x218   :  { %505 = shalt.err (!%p502_p2)
}
 0x219   :  { %s506_s9 = scalar_lea.hbm %s662_s5, 256 }
 0x21a   :  { %p507_p3 = scmp.ne.s32.totalorder %s662_s5, %s506_s9  ;;  %p510_p4 = scmp.lt.u32.totalorder %s506_s9, %s662_s5 }
 0x21c   :  { %p512_p5 = pnand %p510_p4, %p507_p3 }
 0x21e   :  { %515 = shalt.err (!%p512_p5)
}
 0x21f   :  { %292 = dma.vmem_to_hbm [thread:$0]  %s287_s3, 256, %s662_s5, [#allocation4], %s526_s30, %s526_s30, %s527_s6  }
 0x220   :  { %522 = dma.done.wait [#allocation4], 256  }
 0x221   :  { %523 = vsyncadd [#allocation4], 4294967040 }
 0x222   :  { %296 = vsyncpa [#allocation3], 1 }
 0x223   :  { %297 = vsyncpa [#allocation6], 1 }
 0x224   :  { %298 = vsyncpa [#allocation9], 1 }
 0x225   :  { %299 = vsyncpa [#allocation4], 1 }

// kernel: tpu_custom_call.1
= control target key start
LH: loop header
LB: loop body
LE: loop exit
PB: predicated region body
PF: predicated region fallthrough
CT: control target
= control target key end

     0   :  { %10 = vsyncpa [#allocation3], 0  ;;  %s657_s0 = inlined_call_operand.hbm [shape: f32[16,32], index: 0, kind: input, shape index: {}]   ;;  %s658_s1 = inlined_call_operand.hbm [shape: f32[32,64], index: 1, kind: input, shape index: {}]   ;;  %s659_s2 = inlined_call_operand.hbm [shape: f32[1,64], index: 2, kind: input, shape index: {}]   ;;  %s660_s3 = inlined_call_operand.hbm [shape: f32[64,32], index: 3, kind: input, shape index: {}]   ;;  %s661_s4 = inlined_call_operand.hbm [shape: f32[1,32], index: 4, kind: input, shape index: {}]   ;;  %s662_s5 = inlined_call_operand.hbm [shape: f32[16,32], index: 5, kind: output, shape index: {}]  }
   0x1   :  { %11 = vsyncpa [#allocation6], 0 }
   0x2   :  { %12 = vsyncpa [#allocation9], 0 }
   0x3   :  { %13 = vsyncpa [#allocation4], 0  ;;  %s524_s18 = smov [#allocation5]   ;;  %s525_s20 = smov [#allocation8]  }
   0x4   :  { %s31_s19 = sshll.u32 %s524_s18, 4  ;;  %s53_s21 = sshll.u32 %s525_s20, 4  ;;  %s32_s19 = int_to_ptr.vmem [resolvable:$true] %s31_s19  ;;  %s562_s21 = int_to_ptr.vmem [resolvable:$true] %s53_s21 }
   0x5   :  { %s384_s24 = scalar_lea.hbm %s658_s1, 512 }
   0x6   :  { %p385_p0 = scmp.ne.s32.totalorder %s658_s1, %s384_s24  ;;  %p388_p1 = scmp.lt.u32.totalorder %s384_s24, %s658_s1 }
   0x8   :  { %p390_p2 = pnand %p388_p1, %p385_p0 }
   0xa   :  { %393 = shalt.err (!%p390_p2)
}
   0xb   :  { %s394_s29 = scalar_lea.vmem %s32_s19, 512  ;;  %p399_p4 = scmp.lt.s32.totalorder %s32_s19, %s32_s19 }
   0xc   :  { %p395_p3 = scmp.ne.s32.totalorder %s32_s19, %s394_s29  ;;  %p400_p5 = scmp.lt.s32.totalorder %s394_s29, %s394_s29 }
   0xe   :  { %p401_p6 = por %p400_p5, %p399_p4 }
  0x10   :  { %p402_p7 = pnand %p401_p6, %p395_p3 }
  0x12   :  { %405 = shalt.err (!%p402_p7)
}
  0x13   :  { %s526_s30 = smov 128   ;;  %s527_s6 = smov 8  }
  0x14   :  { %37 = dma.hbm_to_vmem [thread:$0]  %s658_s1, 512, %s32_s19, [#allocation6], %s526_s30, %s526_s30, %s527_s6  }
  0x15   :  { %s406_s11 = scalar_lea.hbm %s660_s3, 1024 }
  0x16   :  { %p407_p8 = scmp.ne.s32.totalorder %s660_s3, %s406_s11  ;;  %p410_p9 = scmp.lt.u32.totalorder %s406_s11, %s660_s3 }
  0x18   :  { %p412_p10 = pnand %p410_p9, %p407_p8 }
  0x1a   :  { %415 = shalt.err (!%p412_p10)
}
  0x1b   :  { %s416_s16 = scalar_lea.vmem %s562_s21, 1024  ;;  %p421_p12 = scmp.lt.s32.totalorder %s562_s21, %s562_s21 }
  0x1c   :  { %p417_p11 = scmp.ne.s32.totalorder %s562_s21, %s416_s16  ;;  %p422_p13 = scmp.lt.s32.totalorder %s416_s16, %s416_s16 }
  0x1e   :  { %p423_p0 = por %p422_p13, %p421_p12 }
  0x20   :  { %p424_p1 = pnand %p423_p0, %p417_p11 }
  0x22   :  { %427 = shalt.err (!%p424_p1)
}
  0x23   :  { %59 = dma.hbm_to_vmem [thread:$0]  %s660_s3, 1024, %s562_s21, [#allocation9], %s526_s30, %s526_s30, %s527_s6  }
  0x24   :  { %s528_s18 = smov [#allocation2]   ;;  %s529_s20 = smov [#allocation7]  }
  0x25   :  { %s19_s19 = sshll.u32 %s528_s18, 4  ;;  %s44_s22 = sshll.u32 %s529_s20, 4  ;;  %s20_s19 = int_to_ptr.vmem [resolvable:$true] %s19_s19  ;;  %s45_s22 = int_to_ptr.vmem [resolvable:$true] %s44_s22 }
  0x26   :  { %s428_s25 = scalar_lea.hbm %s657_s0, 256 }
  0x27   :  { %p429_p2 = scmp.ne.s32.totalorder %s657_s0, %s428_s25  ;;  %p432_p3 = scmp.lt.u32.totalorder %s428_s25, %s657_s0 }
  0x29   :  { %p434_p4 = pnand %p432_p3, %p429_p2 }
  0x2b   :  { %437 = shalt.err (!%p434_p4)
}
  0x2c   :  { %s438_s3 = scalar_lea.vmem %s20_s19, 256  ;;  %p443_p6 = scmp.lt.s32.totalorder %s20_s19, %s20_s19 }
  0x2d   :  { %p439_p5 = scmp.ne.s32.totalorder %s20_s19, %s438_s3  ;;  %p444_p7 = scmp.lt.s32.totalorder %s438_s3, %s438_s3 }
  0x2f   :  { %p445_p8 = por %p444_p7, %p443_p6 }
  0x31   :  { %p446_p9 = pnand %p445_p8, %p439_p5 }
  0x33   :  { %449 = shalt.err (!%p446_p9)
}
  0x34   :  { %25 = dma.hbm_to_vmem [thread:$0]  %s657_s0, 256, %s20_s19, [#allocation3], %s526_s30, %s526_s30, %s527_s6  }
  0x35   :  { %s450_s10 = scalar_lea.hbm %s659_s2, 16 }
  0x36   :  { %p451_p10 = scmp.ne.s32.totalorder %s659_s2, %s450_s10  ;;  %p454_p11 = scmp.lt.u32.totalorder %s450_s10, %s659_s2 }
  0x38   :  { %p456_p12 = pnand %p454_p11, %p451_p10 }
  0x3a   :  { %459 = shalt.err (!%p456_p12)
}
  0x3b   :  { %s460_s15 = scalar_lea.vmem %s45_s22, 16  ;;  %s464_s16 = scalar_lea.vmem %s45_s22, 32 }
  0x3c   :  { %p461_p13 = scmp.ne.s32.totalorder %s45_s22, %s460_s15  ;;  %p465_p0 = scmp.lt.s32.totalorder %s45_s22, %s45_s22 }
  0x3d   :  { %p466_p1 = scmp.lt.s32.totalorder %s464_s16, %s460_s15 }
  0x3f   :  { %p467_p2 = por %p466_p1, %p465_p0 }
  0x41   :  { %p468_p3 = pnand %p467_p2, %p461_p13 }
  0x43   :  { %471 = shalt.err (!%p468_p3)
}
  0x44   :  { %47 = dma.hbm_to_vmem [thread:$0]  %s659_s2, 16, %s45_s22, [#allocation6]  }
  0x45   :  { %s530_s17 = smov [#allocation10]   ;;  %s472_s23 = scalar_lea.hbm %s661_s4, 16 }
  0x46   :  { %s66_s18 = sshll.u32 %s530_s17, 4  ;;  %p473_p4 = scmp.ne.s32.totalorder %s661_s4, %s472_s23  ;;  %s67_s18 = int_to_ptr.vmem [resolvable:$true] %s66_s18 }
  0x47   :  { %p476_p5 = scmp.lt.u32.totalorder %s472_s23, %s661_s4 }
  0x49   :  { %p478_p6 = pnand %p476_p5, %p473_p4 }
  0x4b   :  { %481 = shalt.err (!%p478_p6)
}
  0x4c   :  { %s482_s28 = scalar_lea.vmem %s67_s18, 16  ;;  %s486_s2 = scalar_lea.vmem %s67_s18, 32 }
  0x4d   :  { %p483_p7 = scmp.ne.s32.totalorder %s67_s18, %s482_s28  ;;  %p487_p8 = scmp.lt.s32.totalorder %s67_s18, %s67_s18 }
  0x4e   :  { %p488_p9 = scmp.lt.s32.totalorder %s486_s2, %s482_s28 }
  0x50   :  { %p489_p10 = por %p488_p9, %p487_p8 }
  0x52   :  { %p490_p11 = pnand %p489_p10, %p483_p7 }
  0x54   :  { %493 = shalt.err (!%p490_p11)
}
  0x55   :  { %69 = dma.hbm_to_vmem [thread:$0]  %s661_s4, 16, %s67_s18, [#allocation9]  }
  0x56   :  { %516 = dma.done.wait [#allocation3], 256  }
  0x57   :  { %517 = vsyncadd [#allocation3], 4294967040 }
  0x58   :  { %518 = dma.done.wait [#allocation6], 528  }
  0x59   :  { %519 = vsyncadd [#allocation6], 4294966768 }
  0x5a   :  { %520 = dma.done.wait [#allocation9], 1040  }
  0x5b   :  { %521 = vsyncadd [#allocation9], 4294966256  ;;  %vm98_vm0 = vcmask 261120   ;;  %v87_v0 = vld [vmem:[#allocation5] sm:$0xff]  ;;  %v88_v1 = vld [vmem:[#allocation5 + $0x8] sm:$0xff]  ;;  %vm197_vm1 = vcmask 523264  }
  0x5c   :  { %v89_v2 = vld [vmem:[#allocation5 + $0x10] sm:$0xff]  ;;  %v352_v3 = vpack.c.bf16 %v88_v1, %v87_v0  ;;  %v90_v4 = vld [vmem:[#allocation5 + $0x18] sm:$0xff]  ;;  %v182_v7 = vld [vmem:[#allocation8] sm:$0xff]  ;;  %s531_s4 = smov [#allocation11]  }
  0x5d   :  { %v85_v5 = vld [vmem:[#allocation2] sm:$0xff]  ;;  %v356_v6 = vpack.c.bf16 %v90_v4, %v89_v2  ;;  %v185_v11 = vld [vmem:[#allocation8 + $0x18] sm:$0xff]  ;;  %v186_v13 = vld [vmem:[#allocation8 + $0x20] sm:$0xff]  ;;  %s286_s3 = sshll.u32 %s531_s4, 4  ;;  %s287_s3 = int_to_ptr.vmem [resolvable:$true] %s286_s3 }
  0x5e   :  { %330 = vmatprep.mubr.msk.f32.mxu0 %vm98_vm0, %v85_v5  ;;  %v183_v8 = vld [vmem:[#allocation8 + $0x8] sm:$0xff]  ;;  %v184_v9 = vld [vmem:[#allocation8 + $0x10] sm:$0xff]  ;;  %353 = vmatprep.subr.bf16.mxu0 %v352_v3  ;;  %v189_v18 = vld [vmem:[#allocation8 + $0x38] sm:$0xff]  ;;  %s494_s21 = scalar_lea.vmem %s287_s3, 256  ;;  %p499_p13 = scmp.lt.s32.totalorder %s287_s3, %s287_s3 }
  0x5f   :  { %v360_v10 = vpack.c.bf16 %v183_v8, %v182_v7  ;;  %355 = vmatpush3.bf16.msra.mxu0 %v352_v3  ;;  %v364_v12 = vpack.c.bf16 %v185_v11, %v184_v9  ;;  %v187_v14 = vld [vmem:[#allocation8 + $0x28] sm:$0xff]  ;;  %v86_v16 = vld [vmem:[#allocation2 + $0x8] sm:$0xff]  ;;  %v300_v20 = vld [vmem:[#allocation7] ss:$0 sm:$0xff]  ;;  %p495_p12 = scmp.ne.s32.totalorder %s287_s3, %s494_s21  ;;  %p500_p0 = scmp.lt.s32.totalorder %s494_s21, %s494_s21 }
  0x60   :  { %357 = vmatprep.subr.bf16.mxu0 %v356_v6  ;;  %v368_v15 = vpack.c.bf16 %v187_v14, %v186_v13  ;;  %v188_v17 = vld [vmem:[#allocation8 + $0x30] sm:$0xff]  ;;  %v303_v27 = vld [vmem:[#allocation10] ss:$0 sm:$0xff] }
  0x61   :  { %361 = vmatprep.subr.bf16.mxu1 %v360_v10  ;;  %v372_v19 = vpack.c.bf16 %v189_v18, %v188_v17  ;;  %p501_p1 = por %p500_p0, %p499_p13 }
  0x62   :  { %363 = vmatpush3.bf16.msra.mxu1 %v360_v10 }
  0x63   :  { %365 = vmatprep.subr.bf16.mxu1 %v364_v12  ;;  %359 = vmatpush3.bf16.msra.mxu0 %v356_v6  ;;  %p502_p2 = pnand %p501_p1, %p495_p12 }
  0x66   :  { %367 = vmatpush3.bf16.msra.mxu1 %v364_v12  ;;  %331 = vmatmul.mubr.msk.f32.vlgmr.msra.gmra.mrb[0].mxu0 %vm98_vm0, %v86_v16 }
  0x67   :  { %369 = vmatprep.subr.bf16.mxu1 %v368_v15 }
  0x6a   :  { %371 = vmatpush3.bf16.msra.mxu1 %v368_v15 }
  0x6b   :  { %373 = vmatprep.subr.bf16.mxu1 %v372_v19 }
  0x6e   :  { %375 = vmatpush3.bf16.msra.mxu1 %v372_v19 }
 0x139   :  { %v332_v21 = vpop.f32.mrb[0].mxu0 }
 0x13a   :  { %v177_v22 = vadd.f32 %v332_v21, %v300_v20  ;;  %v171_v23 = vpop.f32.mrb[1].mxu0 }
 0x13b   :  { %v172_v24 = vadd.f32 %v300_v20, %v171_v23 }
 0x13c   :  { %v181_v26 = vmax.f32 %v177_v22, 0.0 }
 0x13d   :  { %v180_v25 = vmax.f32 %v172_v24, 0.0 }
 0x13f   :  { %349 = vmatprep.mubr.msk.f32.mxu1 %vm197_vm1, %v180_v25 }
 0x140   :  { %350 = vmatmul.mubr.msk.f32.vlgmr.msra.gmra.mrb[0].mxu1 %vm197_vm1, %v181_v26 }
 0x213   :  { %v351_v28 = vpop.f32.mrb[0].mxu1 }
 0x214   :  { %v276_v29 = vadd.f32 %v351_v28, %v303_v27  ;;  %v270_v30 = vpop.f32.mrb[1].mxu1 }
 0x215   :  { %v271_v31 = vadd.f32 %v303_v27, %v270_v30 }
 0x216   :  { %280 = vst.msk [vmem:[#allocation11 + $0x8] sm:$0xff] %vm98_vm0, %v276_v29 }
 0x217   :  { %279 = vst.msk [vmem:[#allocation11] sm:$0xff] %vm98_vm0, %v271_v31 }
 0x218   :  { %505 = shalt.err (!%p502_p2)
}
 0x219   :  { %s506_s9 = scalar_lea.hbm %s662_s5, 256 }
 0x21a   :  { %p507_p3 = scmp.ne.s32.totalorder %s662_s5, %s506_s9  ;;  %p510_p4 = scmp.lt.u32.totalorder %s506_s9, %s662_s5 }
 0x21c   :  { %p512_p5 = pnand %p510_p4, %p507_p3 }
 0x21e   :  { %515 = shalt.err (!%p512_p5)
}
 0x21f   :  { %292 = dma.vmem_to_hbm [thread:$0]  %s287_s3, 256, %s662_s5, [#allocation4], %s526_s30, %s526_s30, %s527_s6  }
 0x220   :  { %522 = dma.done.wait [#allocation4], 256  }
 0x221   :  { %523 = vsyncadd [#allocation4], 4294967040 }
 0x222   :  { %296 = vsyncpa [#allocation3], 1 }
 0x223   :  { %297 = vsyncpa [#allocation6], 1 }
 0x224   :  { %298 = vsyncpa [#allocation9], 1 }
 0x225   :  { %299 = vsyncpa [#allocation4], 1 }

</bundles_post_ra>
